<compile_context>
chip_gen: v7x
topology: tpu7x:2x2x1
jax: 0.10.0
libtpu: 0.0.40
codegen_flags: <defaults>
</compile_context>

<pallas_src>
import functools

import jax
import jax.numpy as jnp
from jax.experimental import pallas as pl
from jax.experimental.pallas import tpu as pltpu


# --------------------------- tiling helpers ---------------------------
def _pick_m_tile(m):
    for t in (512, 256, 128):
        if m % t == 0:
            return t
    return m  # small M: single full-extent block


def _pick_t_block(s, target=16):
    for t in range(min(s, target), 0, -1):
        if s % t == 0:
            return t
    return 1


# ------------------ tiled (matmul + bias) projection kernel ------------------
def _proj_kernel(x_ref, w_ref, b_ref, o_ref):
    o_ref[...] = (
        jnp.dot(x_ref[...], w_ref[...], preferred_element_type=jnp.float32)
        + b_ref[...]
    ).astype(o_ref.dtype)


def proj(x2d, w, b):
    """(M, K) @ (K, N) + (1, N) -> (M, N), tiled over M, parallel grid."""
    M, K = x2d.shape
    N = w.shape[1]
    tm = _pick_m_tile(M)
    return pl.pallas_call(
        _proj_kernel,
        grid=(M // tm,),
        in_specs=[
            pl.BlockSpec((tm, K), lambda m: (m, 0)),
            pl.BlockSpec((K, N), lambda m: (0, 0)),
            pl.BlockSpec((1, N), lambda m: (0, 0)),
        ],
        out_specs=pl.BlockSpec((tm, N), lambda m: (m, 0)),
        out_shape=jax.ShapeDtypeStruct((M, N), jnp.float32),
        compiler_params=pltpu.CompilerParams(
            dimension_semantics=("parallel",)),
    )(x2d, w, b)


# -------------- fused embedding + layer-0 input projection kernel --------------
def _embed_proj_kernel(x_ref, we_ref, be_ref, wih_ref, b_ref, o_ref):
    # emb = x @ W_emb + b_emb   (Dropout(p) is identity at inference)
    emb = (
        jnp.dot(x_ref[...], we_ref[...], preferred_element_type=jnp.float32)
        + be_ref[...]
    )
    # gates_in = emb @ W_ih + (b_ih + b_hh)
    o_ref[...] = (
        jnp.dot(emb, wih_ref[...], preferred_element_type=jnp.float32)
        + b_ref[...]
    ).astype(o_ref.dtype)


def embed_proj(x2d, we, be, wih, b):
    M, Din = x2d.shape
    E = we.shape[1]
    N = wih.shape[1]
    tm = _pick_m_tile(M)
    return pl.pallas_call(
        _embed_proj_kernel,
        grid=(M // tm,),
        in_specs=[
            pl.BlockSpec((tm, Din), lambda m: (m, 0)),
            pl.BlockSpec((Din, E), lambda m: (0, 0)),
            pl.BlockSpec((1, E), lambda m: (0, 0)),
            pl.BlockSpec((E, N), lambda m: (0, 0)),
            pl.BlockSpec((1, N), lambda m: (0, 0)),
        ],
        out_specs=pl.BlockSpec((tm, N), lambda m: (m, 0)),
        out_shape=jax.ShapeDtypeStruct((M, N), jnp.float32),
        compiler_params=pltpu.CompilerParams(
            dimension_semantics=("parallel",)),
    )(x2d, we, be, wih, b)


# ----------------------------- LSTM recurrence -----------------------------
def _sigmoid_eup(x):
    # one EUP op (tanh) instead of exp + reciprocal
    return 0.5 * jnp.tanh(0.5 * x) + 0.5


def _lstm_recurrence_kernel(t_blk, g_ref, whh_ref, out_ref, hf_ref, cf_ref):
    # g_ref:   (T_BLK, B, 4H)  precomputed x @ W_ih + b for this time block
    # whh_ref: (H, 4H)         recurrent weights (grid-invariant, VMEM-resident)
    # out_ref: (T_BLK, B, H)   layer outputs for this time block
    # hf_ref / cf_ref: (B, H)  final hidden/cell — constant-index resident output
    #                          blocks used directly as the recurrent state.
    tb = pl.program_id(0)

    @pl.when(tb == 0)
    def _():
        hf_ref[...] = jnp.zeros_like(hf_ref)
        cf_ref[...] = jnp.zeros_like(cf_ref)

    H = hf_ref.shape[-1]
    h = hf_ref[...]
    c = cf_ref[...]
    for i in range(t_blk):  # static unroll; constant indices -> aligned loads/stores
        gates = g_ref[i] + jnp.dot(h, whh_ref[...],
                                   preferred_element_type=jnp.float32)
        # PyTorch gate order: i, f, g, o  (lane-aligned slices when H % 128 == 0)
        i_g = _sigmoid_eup(gates[:, 0 * H:1 * H])
        f_g = _sigmoid_eup(gates[:, 1 * H:2 * H])
        g_g = jnp.tanh(gates[:, 2 * H:3 * H])
        o_g = _sigmoid_eup(gates[:, 3 * H:4 * H])
        c = f_g * c + i_g * g_g
        h = o_g * jnp.tanh(c)
        out_ref[i] = h
    # one state store per time block (not per timestep)
    hf_ref[...] = h
    cf_ref[...] = c


def lstm_layer(gates_in, w_hh):
    """gates_in: (S, B, 4H) time-major, already includes x@W_ih + (b_ih + b_hh).

    Returns out_seq (S, B, H), h_final (B, H), c_final (B, H)."""
    S, B, G = gates_in.shape
    H = w_hh.shape[0]
    assert G == 4 * H
    t_blk = _pick_t_block(S)
    kernel = functools.partial(_lstm_recurrence_kernel, t_blk)
    out_seq, h_f, c_f = pl.pallas_call(
        kernel,
        grid=(S // t_blk,),
        in_specs=[
            pl.BlockSpec((t_blk, B, 4 * H), lambda tb: (tb, 0, 0)),
            pl.BlockSpec((H, 4 * H), lambda tb: (0, 0)),
        ],
        out_specs=[
            pl.BlockSpec((t_blk, B, H), lambda tb: (tb, 0, 0)),
            pl.BlockSpec((B, H), lambda tb: (0, 0)),
            pl.BlockSpec((B, H), lambda tb: (0, 0)),
        ],
        out_shape=[
            jax.ShapeDtypeStruct((S, B, H), jnp.float32),
            jax.ShapeDtypeStruct((B, H), jnp.float32),
            jax.ShapeDtypeStruct((B, H), jnp.float32),
        ],
        compiler_params=pltpu.CompilerParams(
            dimension_semantics=("arbitrary",)),  # time recurrence is sequential
    )(gates_in, w_hh)
    return out_seq, h_f, c_f


# --------------------------------- Encoder ---------------------------------
def encoder_forward(src, params, num_layers):
    """src: (B, S, input_dim) float32 -> (hidden, cell): each (num_layers, B, H)."""
    B, S, Din = src.shape

    # Tiny transpose of the raw (Din-wide) input so every downstream activation is
    # already time-major — no large transpose between pallas_calls.
    src_tm = jnp.transpose(src, (1, 0, 2)).reshape(S * B, Din)

    # Dropout on the embedding / between layers is identity at inference.
    # TODO(synk): training-mode dropout masks (torch RNG) are not reproduced.

    hiddens, cells = [], []
    x2d = None
    for layer in range(num_layers):
        p = params["lstm"][layer]
        H = p["w_hh"].shape[0]
        if layer == 0:
            # fused: gates_in = (src @ W_emb + b_emb) @ W_ih0 + b0
            gates_in = embed_proj(src_tm, params["emb_w"], params["emb_b"],
                                  p["w_ih"], p["b"])
        else:
            gates_in = proj(x2d, p["w_ih"], p["b"])
        out_seq, h_f, c_f = lstm_layer(gates_in.reshape(S, B, 4 * H), p["w_hh"])
        hiddens.append(h_f)
        cells.append(c_f)
        x2d = out_seq.reshape(S * B, H)

    hidden = jnp.stack(hiddens, axis=0)  # (num_layers, B, H)
    cell = jnp.stack(cells, axis=0)      # (num_layers, B, H)
    return hidden, cell


def init_params(key, input_dim, emb_dim, hidden_dim, num_layers):
    keys = jax.random.split(key, 2 + 3 * num_layers)
    bound_e = 1.0 / jnp.sqrt(input_dim)
    params = {
        "emb_w": jax.random.uniform(keys[0], (input_dim, emb_dim), jnp.float32,
                                    -bound_e, bound_e),
        "emb_b": jax.random.uniform(keys[1], (1, emb_dim), jnp.float32,
                                    -bound_e, bound_e),
        "lstm": [],
    }
    bound = 1.0 / jnp.sqrt(hidden_dim)
    for layer in range(num_layers):
        in_sz = emb_dim if layer == 0 else hidden_dim
        k0, k1, k2 = keys[2 + 3 * layer: 5 + 3 * layer]
        params["lstm"].append({
            # stored as (in, 4H) / (H, 4H), i.e. transposed PyTorch weight_ih/weight_hh
            "w_ih": jax.random.uniform(k0, (in_sz, 4 * hidden_dim), jnp.float32,
                                       -bound, bound),
            "w_hh": jax.random.uniform(k1, (hidden_dim, 4 * hidden_dim), jnp.float32,
                                       -bound, bound),
            # combined b_ih + b_hh
            "b": jax.random.uniform(k2, (1, 4 * hidden_dim), jnp.float32,
                                    -bound, bound),
        })
    return params


# ------------------------------ pure-JAX reference ------------------------------
def encoder_reference(src, params, num_layers):
    B, S, Din = src.shape
    emb = src.reshape(B * S, Din) @ params["emb_w"] + params["emb_b"]
    E = params["emb_w"].shape[1]
    x = emb.reshape(B, S, E)
    hiddens, cells = [], []
    for layer in range(num_layers):
        p = params["lstm"][layer]
        H = p["w_hh"].shape[0]
        h = jnp.zeros((B, H), jnp.float32)
        c = jnp.zeros((B, H), jnp.float32)
        outs = []
        for t in range(S):
            gates = x[:, t, :] @ p["w_ih"] + h @ p["w_hh"] + p["b"]
            i_g = jax.nn.sigmoid(gates[:, 0:H])
            f_g = jax.nn.sigmoid(gates[:, H:2 * H])
            g_g = jnp.tanh(gates[:, 2 * H:3 * H])
            o_g = jax.nn.sigmoid(gates[:, 3 * H:4 * H])
            c = f_g * c + i_g * g_g
            h = o_g * jnp.tanh(c)
            outs.append(h)
        x = jnp.stack(outs, axis=1)
        hiddens.append(h)
        cells.append(c)
    return jnp.stack(hiddens, 0), jnp.stack(cells, 0)


if __name__ == "__main__":
    # small shapes; hidden_dim chosen as a multiple of 128 for lane-aligned gates
    input_dim, emb_dim, hidden_dim, num_layers = 16, 32, 128, 2
    B, S = 2, 8

    key = jax.random.PRNGKey(0)
    k_param, k_src = jax.random.split(key)
    params = init_params(k_param, input_dim, emb_dim, hidden_dim, num_layers)
    src = jax.random.normal(k_src, (B, S, input_dim), jnp.float32)

    hidden, cell = encoder_forward(src, params, num_layers)
    jax.block_until_ready((hidden, cell))

    h_ref, c_ref = encoder_reference(src, params, num_layers)
    assert hidden.shape == (num_layers, B, hidden_dim)
    assert cell.shape == (num_layers, B, hidden_dim)
    assert jnp.allclose(hidden, h_ref, atol=1e-4, rtol=1e-4)
    assert jnp.allclose(cell, c_ref, atol=1e-4, rtol=1e-4)

    print("KERNEL_OK")
</pallas_src>

<mosaic_0001>
module attributes {stable_mosaic.version = 11 : i64} {
  func.func @_embed_proj_kernel(%arg0: i32, %arg1: memref<16x16xf32, #tpu.memory_space<vmem>>, %arg2: memref<16x32xf32, #tpu.memory_space<vmem>>, %arg3: memref<1x32xf32, #tpu.memory_space<vmem>>, %arg4: memref<32x512xf32, #tpu.memory_space<vmem>>, %arg5: memref<1x512xf32, #tpu.memory_space<vmem>>, %arg6: memref<16x512xf32, #tpu.memory_space<vmem>>) attributes {dimension_semantics = [#tpu.dimension_semantics<parallel>], iteration_bounds = array<i64: 1>, scalar_prefetch = 0 : i64, scratch_operands = 0 : i64, tpu.core_type = #tpu.core_type<tc>, window_params = [{transform_indices = @transform_0, window_bounds = array<i64: 16, 16>}, {pipeline_mode = #tpu.pipeline_mode<synchronous>, transform_indices = @transform_1, window_bounds = array<i64: 16, 32>}, {pipeline_mode = #tpu.pipeline_mode<synchronous>, transform_indices = @transform_2, window_bounds = array<i64: 1, 32>}, {pipeline_mode = #tpu.pipeline_mode<synchronous>, transform_indices = @transform_3, window_bounds = array<i64: 32, 512>}, {pipeline_mode = #tpu.pipeline_mode<synchronous>, transform_indices = @transform_4, window_bounds = array<i64: 1, 512>}, {transform_indices = @transform_5, window_bounds = array<i64: 16, 512>}]} {
    %c0 = arith.constant 0 : index
    %c0_0 = arith.constant 0 : index
    %0 = vector.load %arg1[%c0, %c0_0] : memref<16x16xf32, #tpu.memory_space<vmem>>, vector<16x16xf32>
    %c0_1 = arith.constant 0 : index
    %c0_2 = arith.constant 0 : index
    %1 = vector.load %arg2[%c0_1, %c0_2] : memref<16x32xf32, #tpu.memory_space<vmem>>, vector<16x32xf32>
    %cst = arith.constant dense<0.000000e+00> : vector<16x32xf32>
    %2 = tpu.matmul %0, %1, %cst {dimension_numbers = #tpu.dot_dimension_numbers<[1], [0], [0], [1], [0, 0, 1, 1], [], []>} : vector<16x16xf32>, vector<16x32xf32>, vector<16x32xf32> -> vector<16x32xf32>
    %c0_3 = arith.constant 0 : index
    %c0_4 = arith.constant 0 : index
    %3 = vector.load %arg3[%c0_3, %c0_4] : memref<1x32xf32, #tpu.memory_space<vmem>>, vector<1x32xf32>
    %4 = vector.broadcast %3 : vector<1x32xf32> to vector<16x32xf32>
    %5 = arith.addf %2, %4 : vector<16x32xf32>
    %c0_5 = arith.constant 0 : index
    %c0_6 = arith.constant 0 : index
    %6 = vector.load %arg4[%c0_5, %c0_6] : memref<32x512xf32, #tpu.memory_space<vmem>>, vector<32x512xf32>
    %cst_7 = arith.constant dense<0.000000e+00> : vector<16x512xf32>
    %7 = tpu.matmul %5, %6, %cst_7 {dimension_numbers = #tpu.dot_dimension_numbers<[1], [0], [0], [1], [0, 0, 1, 1], [], []>} : vector<16x32xf32>, vector<32x512xf32>, vector<16x512xf32> -> vector<16x512xf32>
    %c0_8 = arith.constant 0 : index
    %c0_9 = arith.constant 0 : index
    %8 = vector.load %arg5[%c0_8, %c0_9] : memref<1x512xf32, #tpu.memory_space<vmem>>, vector<1x512xf32>
    %9 = vector.broadcast %8 : vector<1x512xf32> to vector<16x512xf32>
    %10 = arith.addf %7, %9 : vector<16x512xf32>
    %c0_10 = arith.constant 0 : index
    %c0_11 = arith.constant 0 : index
    %11 = vector.load %arg6[%c0_10, %c0_11] : memref<16x512xf32, #tpu.memory_space<vmem>>, vector<16x512xf32>
    tpu.vector_store %arg6[%c0_10, %c0_11], %10 {strides = array<i32>} : memref<16x512xf32, #tpu.memory_space<vmem>>, vector<16x512xf32>,
    return
  }
  func.func @transform_0(%arg0: i32) -> (i32, i32) {
    %c0_i32 = arith.constant 0 : i32
    %c0_i32_0 = arith.constant 0 : i32
    return %arg0, %c0_i32 : i32, i32
  }
  func.func @transform_1(%arg0: i32) -> (i32, i32) {
    %c0_i32 = arith.constant 0 : i32
    %c0_i32_0 = arith.constant 0 : i32
    %c0_i32_1 = arith.constant 0 : i32
    return %c0_i32, %c0_i32_0 : i32, i32
  }
  func.func @transform_2(%arg0: i32) -> (i32, i32) {
    %c0_i32 = arith.constant 0 : i32
    %c0_i32_0 = arith.constant 0 : i32
    %c0_i32_1 = arith.constant 0 : i32
    return %c0_i32, %c0_i32_0 : i32, i32
  }
  func.func @transform_3(%arg0: i32) -> (i32, i32) {
    %c0_i32 = arith.constant 0 : i32
    %c0_i32_0 = arith.constant 0 : i32
    %c0_i32_1 = arith.constant 0 : i32
    return %c0_i32, %c0_i32_0 : i32, i32
  }
  func.func @transform_4(%arg0: i32) -> (i32, i32) {
    %c0_i32 = arith.constant 0 : i32
    %c0_i32_0 = arith.constant 0 : i32
    %c0_i32_1 = arith.constant 0 : i32
    return %c0_i32, %c0_i32_0 : i32, i32
  }
  func.func @transform_5(%arg0: i32) -> (i32, i32) {
    %c0_i32 = arith.constant 0 : i32
    %c0_i32_0 = arith.constant 0 : i32
    return %arg0, %c0_i32 : i32, i32
  }
}

</mosaic_0001>

<bundles_post_ra>
// kernel: tpu_custom_call.1
= control target key start
LH: loop header
LB: loop body
LE: loop exit
PB: predicated region body
PF: predicated region fallthrough
CT: control target
= control target key end

     0   :  { %10 = vsyncpa [#allocation3], 0  ;;  %s629_s0 = inlined_call_operand.hbm [shape: f32[16,16], index: 0, kind: input, shape index: {}]   ;;  %s630_s1 = inlined_call_operand.hbm [shape: f32[16,32], index: 1, kind: input, shape index: {}]   ;;  %s631_s2 = inlined_call_operand.vmem [shape: f32[1,32], index: 2, kind: input, shape index: {}]   ;;  %s632_s3 = inlined_call_operand.hbm [shape: f32[32,512], index: 3, kind: input, shape index: {}]   ;;  %s633_s4 = inlined_call_operand.vmem [shape: f32[1,512], index: 4, kind: input, shape index: {}]   ;;  %s634_s5 = inlined_call_operand.hbm [shape: f32[16,512], index: 5, kind: output, shape index: {}]  }
   0x1   :  { %11 = vsyncpa [#allocation6], 0 }
   0x2   :  { %12 = vsyncpa [#allocation4], 0  ;;  %s521_s18 = smov [#allocation5]   ;;  %s522_s20 = smov [#allocation2]  }
   0x3   :  { %s30_s19 = sshll.u32 %s521_s18, 4  ;;  %s18_s21 = sshll.u32 %s522_s20, 4  ;;  %s31_s19 = int_to_ptr.vmem [resolvable:$true] %s30_s19  ;;  %s560_s21 = int_to_ptr.vmem [resolvable:$true] %s18_s21 }
   0x4   :  { %s427_s24 = scalar_lea.hbm %s630_s1, 256 }
   0x5   :  { %p428_p0 = scmp.ne.s32.totalorder %s630_s1, %s427_s24  ;;  %p431_p1 = scmp.lt.u32.totalorder %s427_s24, %s630_s1 }
   0x7   :  { %p433_p2 = pnand %p431_p1, %p428_p0 }
   0x9   :  { %436 = shalt.err (!%p433_p2)
}
   0xa   :  { %s437_s29 = scalar_lea.vmem %s31_s19, 256  ;;  %p442_p4 = scmp.lt.s32.totalorder %s31_s19, %s31_s19 }
   0xb   :  { %p438_p3 = scmp.ne.s32.totalorder %s31_s19, %s437_s29  ;;  %p443_p5 = scmp.lt.s32.totalorder %s437_s29, %s437_s29 }
   0xd   :  { %p444_p6 = por %p443_p5, %p442_p4 }
   0xf   :  { %p445_p7 = pnand %p444_p6, %p438_p3 }
  0x11   :  { %448 = shalt.err (!%p445_p7)
}
  0x12   :  { %s523_s30 = smov 128   ;;  %s524_s6 = smov 8  }
  0x13   :  { %36 = dma.hbm_to_vmem [thread:$0]  %s630_s1, 256, %s31_s19, [#allocation6], %s523_s30, %s523_s30, %s524_s6  }
  0x14   :  { %s449_s11 = scalar_lea.hbm %s629_s0, 256 }
  0x15   :  { %p450_p8 = scmp.ne.s32.totalorder %s629_s0, %s449_s11  ;;  %p453_p9 = scmp.lt.u32.totalorder %s449_s11, %s629_s0 }
  0x17   :  { %p455_p10 = pnand %p453_p9, %p450_p8 }
  0x19   :  { %458 = shalt.err (!%p455_p10)
}
  0x1a   :  { %s459_s16 = scalar_lea.vmem %s560_s21, 256  ;;  %p464_p12 = scmp.lt.s32.totalorder %s560_s21, %s560_s21 }
  0x1b   :  { %p460_p11 = scmp.ne.s32.totalorder %s560_s21, %s459_s16  ;;  %p465_p13 = scmp.lt.s32.totalorder %s459_s16, %s459_s16 }
  0x1d   :  { %p466_p0 = por %p465_p13, %p464_p12 }
  0x1f   :  { %p467_p1 = pnand %p466_p0, %p460_p11 }
  0x21   :  { %470 = shalt.err (!%p467_p1)
}
  0x22   :  { %24 = dma.hbm_to_vmem [thread:$0]  %s629_s0, 256, %s560_s21, [#allocation3], %s523_s30, %s523_s30, %s524_s6  }
  0x23   :  { %s525_s18 = smov [#allocation7]   ;;  %s471_s23 = scalar_lea.hbm %s632_s3, 2048 }
  0x24   :  { %s44_s19 = sshll.u32 %s525_s18, 4  ;;  %p472_p2 = scmp.ne.s32.totalorder %s632_s3, %s471_s23  ;;  %s45_s19 = int_to_ptr.vmem [resolvable:$true] %s44_s19 }
  0x25   :  { %p475_p3 = scmp.lt.u32.totalorder %s471_s23, %s632_s3 }
  0x27   :  { %p477_p4 = pnand %p475_p3, %p472_p2 }
  0x29   :  { %480 = shalt.err (!%p477_p4)
}
  0x2a   :  { %s481_s28 = scalar_lea.vmem %s45_s19, 2048  ;;  %p486_p6 = scmp.lt.s32.totalorder %s45_s19, %s45_s19 }
  0x2b   :  { %p482_p5 = scmp.ne.s32.totalorder %s45_s19, %s481_s28  ;;  %p487_p7 = scmp.lt.s32.totalorder %s481_s28, %s481_s28 }
  0x2d   :  { %p488_p8 = por %p487_p7, %p486_p6 }
  0x2f   :  { %p489_p9 = pnand %p488_p8, %p482_p5 }
  0x31   :  { %492 = shalt.err (!%p489_p9)
}
  0x32   :  { %s526_s0 = smov 512   ;;  %s527_s21 = smov 32  }
  0x33   :  { %50 = dma.hbm_to_vmem [thread:$0]  %s632_s3, 2048, %s45_s19, [#allocation6], %s526_s0, %s526_s0, %s527_s21  }
  0x34   :  { %515 = dma.done.wait [#allocation3], 256  }
  0x35   :  { %516 = vsyncadd [#allocation3], 4294967040 }
  0x36   :  { %517 = dma.done.wait [#allocation6], 2304  }
  0x37   :  { %518 = vsyncadd [#allocation6], 4294964992  ;;  %vm73_vm0 = vcmask 130048   ;;  %v64_v0 = vld [vmem:[#allocation5] sm:$0xff]  ;;  %v65_v1 = vld [vmem:[#allocation5 + $0x8] sm:$0xff]  ;;  %v528_v29 = vmov 0.0   ;;  %v173_v35 = vlaneseq }
  0x38   :  { %v62_v2 = vld [vmem:[#allocation2] sm:$0xff]  ;;  %v398_v3 = vpack.c.bf16 %v65_v1, %v64_v0  ;;  %v156_v4 = vld [vmem:[#allocation7 + $0x8] sm:$0xff]  ;;  %v158_v7 = vld [vmem:[#allocation7 + $0x18] sm:$0xff]  ;;  %264 = vmatprep.mubr.f32.mxu1 %v528_v29  ;;  %vm193_vm1 = vcmask 261120  }
  0x39   :  { %395 = vmatprep.mubr.msk.f32.mxu0 %vm73_vm0, %v62_v2  ;;  %v160_v5 = vld [vmem:[#allocation7 + $0x28] sm:$0xff]  ;;  %v162_v8 = vld [vmem:[#allocation7 + $0x38] sm:$0xff]  ;;  %v155_v9 = vld [vmem:[#allocation7] sm:$0xff]  ;;  %v174_v36 = vshrl.u32 %v173_v35, 7 }
  0x3a   :  { %v402_v6 = vpack.c.bf16 %v160_v5, %v156_v4  ;;  %399 = vmatprep.subr.bf16.mxu0 %v398_v3  ;;  %v410_v10 = vpack.c.bf16 %v162_v8, %v158_v7  ;;  %v159_v11 = vld [vmem:[#allocation7 + $0x20] sm:$0xff]  ;;  %v157_v12 = vld [vmem:[#allocation7 + $0x10] sm:$0xff]  ;;  %v63_v14 = vld [vmem:[#allocation2 + $0x8] sm:$0xff] }
  0x3b   :  { %v161_v13 = vld [vmem:[#allocation7 + $0x30] sm:$0xff]  ;;  %401 = vmatpush3.bf16.msra.mxu0 %v398_v3  ;;  %v404_v15 = vpack.c.bf16 %v159_v11, %v155_v9  ;;  %v164_v17 = vld [vmem:[#allocation7 + $0x48] sm:$0xff]  ;;  %v166_v19 = vld [vmem:[#allocation7 + $0x58] sm:$0xff]  ;;  %v175_v37 = vsub.s32 0, %v174_v36  ;;  %v183_v38 = vsub.s32 2, %v174_v36  ;;  %v179_v40 = vsub.s32 1, %v174_v36 }
  0x3c   :  { %403 = vmatprep.subr.bf16.mxu1 %v402_v6  ;;  %v412_v16 = vpack.c.bf16 %v161_v13, %v157_v12  ;;  %411 = vmatprep.subr.bf16.mxu0 %v410_v10  ;;  %v168_v18 = vld [vmem:[#allocation7 + $0x68] sm:$0xff]  ;;  %v170_v21 = vld [vmem:[#allocation7 + $0x78] sm:$0xff]  ;;  %v163_v22 = vld [vmem:[#allocation7 + $0x40] sm:$0xff]  ;;  %v187_v41 = vsub.s32 3, %v174_v36 }
  0x3d   :  { %405 = vmatpush1.bf16.msra.mxu1 %v404_v15  ;;  %v406_v20 = vpack.c.bf16 %v168_v18, %v164_v17  ;;  %v167_v23 = vld [vmem:[#allocation7 + $0x60] sm:$0xff]  ;;  %v414_v24 = vpack.c.bf16 %v170_v21, %v166_v19  ;;  %v165_v26 = vld [vmem:[#allocation7 + $0x50] sm:$0xff] }
  0x3e   :  { %396 = vmatmul.mubr.msk.f32.vlgmr.msra.gmra.mrb[0].mxu0 %vm73_vm0, %v63_v14  ;;  %v408_v25 = vpack.c.bf16 %v167_v23, %v163_v22  ;;  %v169_v27 = vld [vmem:[#allocation7 + $0x70] sm:$0xff]  ;;  %v380_v30 = vld [vmem:[%s631_s2] ss:$0 sm:$0xff]  ;;  %s529_s2 = smov [#allocation8]  }
  0x3f   :  { %413 = vmatpush1.bf16.msra.mxu0 %v412_v16  ;;  %407 = vmatprep.subr.bf16.mxu1 %v406_v20  ;;  %v416_v28 = vpack.c.bf16 %v169_v27, %v165_v26  ;;  %v171_v39 = vld [vmem:[%s633_s4] sm:$0xf]  ;;  %s367_s9 = sshll.u32 %s529_s2, 4  ;;  %s368_s9 = int_to_ptr.vmem [resolvable:$true] %s367_s9 }
  0x40   :  { %415 = vmatprep.subr.bf16.mxu0 %v414_v24  ;;  %341 = vmatprep.mubr.f32.mxu0 %v528_v29  ;;  %v176_v42 = vrot.slane %v171_v39, %v175_v37  ;;  %v184_v43 = vrot.slane %v171_v39, %v183_v38  ;;  %v180_v44 = vrot.slane %v171_v39, %v179_v40  ;;  %s493_s4 = scalar_lea.vmem %s368_s9, 1024  ;;  %p498_p11 = scmp.lt.s32.totalorder %s368_s9, %s368_s9 }
  0x41   :  { %409 = vmatpush1.bf16.msra.mxu1 %v408_v25  ;;  %v188_v45 = vrot.slane %v171_v39, %v187_v41  ;;  %p494_p10 = scmp.ne.s32.totalorder %s368_s9, %s493_s4  ;;  %p499_p12 = scmp.lt.s32.totalorder %s493_s4, %s493_s4 }
  0x43   :  { %417 = vmatpush1.bf16.msra.mxu0 %v416_v28  ;;  %p500_p13 = por %p499_p12, %p498_p11 }
  0x45   :  { %p501_p0 = pnand %p500_p13, %p494_p10 }
 0x111   :  { %v397_v31 = vpop.f32.mrb[0].mxu0 }
 0x112   :  { %v146_v32 = vpop.f32.mrb[1].mxu0  ;;  %v152_v34 = vadd.f32 %v397_v31, %v380_v30 }
 0x113   :  { %v147_v33 = vadd.f32 %v380_v30, %v146_v32 }
 0x115   :  { %383 = vmatmul.mubr.msk.f32.vlgmr.msra.gmra.mrb[0].mxu1 %vm193_vm1, %v147_v33  ;;  %385 = vmatmul.mubr.msk.f32.vlgmr.msra.gmra.mrb[2].mxu0 %vm193_vm1, %v147_v33 }
 0x116   :  { %270 = vmatprep.mubr.f32.mxu1 %v528_v29  ;;  %347 = vmatprep.mubr.f32.mxu0 %v528_v29 }
 0x119   :  { %384 = vmatmul.mubr.msk.f32.gmra.mrb[2].mxu1 %vm193_vm1, %v152_v34  ;;  %386 = vmatmul.mubr.msk.f32.gmra.mrb[4].mxu0 %vm193_vm1, %v152_v34 }
 0x1e8   :  { %v266_v46 = vpop.f32.mrb[0].mxu1  ;;  %v343_v47 = vpop.f32.mrb[2].mxu0 }
 0x1e9   :  { %v267_v48 = vadd.f32 %v266_v46, %v176_v42  ;;  %v344_v49 = vadd.f32 %v343_v47, %v184_v43  ;;  %v268_v50 = vpop.f32.mrb[1].mxu1  ;;  %v345_v51 = vpop.f32.mrb[3].mxu0 }
 0x1ea   :  { %v269_v52 = vadd.f32 %v268_v50, %v180_v44  ;;  %v346_v53 = vadd.f32 %v345_v51, %v188_v45 }
 0x1eb   :  { %354 = vst [vmem:[#allocation8] sm:$0xff] %v267_v48  ;;  %356 = vst [vmem:[#allocation8 + $0x10] sm:$0xff] %v344_v49 }
 0x1ec   :  { %355 = vst [vmem:[#allocation8 + $0x8] sm:$0xff] %v269_v52  ;;  %357 = vst [vmem:[#allocation8 + $0x18] sm:$0xff] %v346_v53  ;;  %v272_v54 = vpop.f32.mrb[2].mxu1  ;;  %v349_v55 = vpop.f32.mrb[4].mxu0 }
 0x1ed   :  { %v273_v56 = vadd.f32 %v272_v54, %v176_v42  ;;  %v350_v57 = vadd.f32 %v349_v55, %v184_v43  ;;  %v274_v58 = vpop.f32.mrb[3].mxu1  ;;  %v351_v59 = vpop.f32.mrb[5].mxu0 }
 0x1ee   :  { %v275_v60 = vadd.f32 %v274_v58, %v180_v44  ;;  %v352_v61 = vadd.f32 %v351_v59, %v188_v45 }
 0x1ef   :  { %358 = vst [vmem:[#allocation8 + $0x20] sm:$0xff] %v273_v56  ;;  %360 = vst [vmem:[#allocation8 + $0x30] sm:$0xff] %v350_v57 }
 0x1f0   :  { %359 = vst [vmem:[#allocation8 + $0x28] sm:$0xff] %v275_v60  ;;  %361 = vst [vmem:[#allocation8 + $0x38] sm:$0xff] %v352_v61 }
 0x1f1   :  { %504 = shalt.err (!%p501_p0)
}
 0x1f2   :  { %s505_s12 = scalar_lea.hbm %s634_s5, 1024 }
 0x1f3   :  { %p506_p1 = scmp.ne.s32.totalorder %s634_s5, %s505_s12  ;;  %p509_p2 = scmp.lt.u32.totalorder %s505_s12, %s634_s5 }
 0x1f5   :  { %p511_p3 = pnand %p509_p2, %p506_p1 }
 0x1f7   :  { %514 = shalt.err (!%p511_p3)
}
 0x1f8   :  { %373 = dma.vmem_to_hbm [thread:$0]  %s368_s9, 1024, %s634_s5, [#allocation4], %s526_s0, %s526_s0, %s527_s21  }
 0x1f9   :  { %519 = dma.done.wait [#allocation4], 1024  }
 0x1fa   :  { %520 = vsyncadd [#allocation4], 4294966272 }
 0x1fb   :  { %377 = vsyncpa [#allocation3], 1 }
 0x1fc   :  { %378 = vsyncpa [#allocation6], 1 }
 0x1fd   :  { %379 = vsyncpa [#allocation4], 1 }

</bundles_post_ra>
